<compile_context>
chip_gen: v6e
topology: v6e:2x2x1
jax: 0.10.0
libtpu: 0.0.40
codegen_flags: <defaults>
</compile_context>

<pallas_src>
import jax
import jax.numpy as jnp
from jax.experimental import pallas as pl
from jax.experimental.pallas import tpu as pltpu


_LANE = 128
_STEP_BYTES_TARGET = 16 * 1024 * 1024   # in+out HBM bytes moved per grid step
_MAX_TL = 128 * 1024                     # sanity cap on lane-tile width
_VMEM_LIMIT = 48 * 1024 * 1024           # < v7x 64 MiB physical, > v5e default
_VMEM_WORK_BUDGET = 40 * 1024 * 1024     # double-buffered working set budget


def _round_up(x, m):
    return ((x + m - 1) // m) * m


def _make_kernel(num_panels):
    """Kernel: one broadcast row times `num_panels` reference-panel tiles."""

    def kernel(x_ref, *refs):
        # x_ref: (1, tl) mixed-haplotype tile, broadcast over sublanes.
        # refs:  (panel_0..panel_{A-1}, out_0..out_{A-1}), each (R_a, tl).
        x = x_ref[...]
        for a in range(num_panels):
            refs[num_panels + a][...] = refs[a][...] * x

    return kernel


@jax.jit
def _xor_multiply(x, panels):
    """out[a] = x[..., None, :] * panels[a], fused into a single pallas_call.

    x:      (L,)      or (B, L)
    panels: tuple of (R_a, L) or (B, R_a, L) arrays (same batching as x).
    Returns a tuple of arrays with the same shapes as `panels`.
    """
    panels = tuple(panels)
    batched = panels[0].ndim == 3
    L = x.shape[-1]
    B = x.shape[0] if batched else 1
    for p in panels:
        assert p.shape[-1] == L and (p.shape[0] == B if batched else True)

    r_sizes = tuple(int(p.shape[-2]) for p in panels)
    out_dtypes = tuple(jnp.result_type(x.dtype, p.dtype) for p in panels)

    # HBM bytes per lane column: read every panel row + x, write every output.
    bytes_per_col = x.dtype.itemsize + sum(
        r * (p.dtype.itemsize + jnp.dtype(o).itemsize)
        for r, p, o in zip(r_sizes, panels, out_dtypes)
    )

    # TODO(synk): tile the reference axis for pathologically large panels
    # (>~20k haplotypes in one call) instead of falling back to plain XLA.
    if 2 * _LANE * bytes_per_col > _VMEM_WORK_BUDGET:
        xe = x[:, None, :] if batched else x[None, :]
        return tuple((xe * p).astype(o) for p, o in zip(panels, out_dtypes))

    # Lane-tile width: ~_STEP_BYTES_TARGET of in+out traffic per grid step,
    # multiple of 128 (unmasked stores except the final boundary tile), or the
    # full unpadded L when it already fits (full-dim blocks are always legal).
    tl = max(_LANE, (_STEP_BYTES_TARGET // bytes_per_col) // _LANE * _LANE)
    tl = min(tl, _MAX_TL)
    if L <= tl:
        tl = L
    num_l_tiles = pl.cdiv(L, tl)

    # Single-step grids can't feed both v7x TensorCores: split L in two
    # 128-aligned tiles (adds no padded HBM traffic, ~0.35us extra step).
    if B * num_l_tiles == 1 and L >= 2 * _LANE:
        tl = _round_up(pl.cdiv(L, 2), _LANE)
        num_l_tiles = pl.cdiv(L, tl)

    # Mixed haplotype gets a size-1 broadcast (sublane) axis.
    x2 = x[:, None, :] if batched else x[None, :]

    if batched:
        x_spec = pl.BlockSpec((None, 1, tl), lambda b, j: (b, 0, j))
        p_specs = [pl.BlockSpec((None, r, tl), lambda b, j: (b, 0, j))
                   for r in r_sizes]
        o_specs = [pl.BlockSpec((None, r, tl), lambda b, j: (b, 0, j))
                   for r in r_sizes]
        out_shapes = [jax.ShapeDtypeStruct((B, r, L), o)
                      for r, o in zip(r_sizes, out_dtypes)]
    else:
        x_spec = pl.BlockSpec((1, tl), lambda b, j: (0, j))
        p_specs = [pl.BlockSpec((r, tl), lambda b, j: (0, j)) for r in r_sizes]
        o_specs = [pl.BlockSpec((r, tl), lambda b, j: (0, j)) for r in r_sizes]
        out_shapes = [jax.ShapeDtypeStruct((r, L), o)
                      for r, o in zip(r_sizes, out_dtypes)]

    grid = (B, num_l_tiles)

    outs = pl.pallas_call(
        _make_kernel(len(panels)),
        out_shape=tuple(out_shapes),
        grid_spec=pltpu.PrefetchScalarGridSpec(
            num_scalar_prefetch=0,
            grid=grid,
            in_specs=[x_spec] + p_specs,
            out_specs=tuple(o_specs),
        ),
        compiler_params=pltpu.CompilerParams(
            dimension_semantics=("parallel", "parallel"),
            vmem_limit_bytes=_VMEM_LIMIT,
        ),
    )(x2, *panels)
    return tuple(outs)


# ---------------------------------------------------------------------------
# Module-level forward, mirroring the PyTorch structure
# ---------------------------------------------------------------------------
def multiply_ref_panel(mixed, ref_panel):
    """out[ancestry] = mixed[None, :] * ref_panel[ancestry] (one fused call)."""
    keys = list(ref_panel.keys())
    if not keys:
        return {}
    outs = _xor_multiply(mixed, tuple(ref_panel[k] for k in keys))
    return dict(zip(keys, outs))


def xor_forward(input_mixed, ref_panel):
    """Mirror of XOR.forward on lists of mixed haplotypes / panel dicts.

    One fused pallas_call per sample, operating directly on the caller's
    per-ancestry arrays: no stacking, no concatenation, no output slicing.
    Identical shapes across samples hit jit's compile cache.
    """
    # TODO(synk): bucket heterogeneous (R, L) shapes to avoid compile storms.
    return [multiply_ref_panel(inp, ref) for inp, ref in zip(input_mixed, ref_panel)]


def xor_forward_arrays(mixed, ref_panels):
    """Batched entry point for pipelines that keep panels pre-stacked.

    mixed: (B, L); ref_panels: {ancestry: (B, R_a, L)} -> {ancestry: (B, R_a, L)}.
    """
    keys = list(ref_panels.keys())
    if not keys:
        return {}
    outs = _xor_multiply(mixed, tuple(ref_panels[k] for k in keys))
    return dict(zip(keys, outs))


# ---------------------------------------------------------------------------
# Demo / self-check
# ---------------------------------------------------------------------------
if __name__ == "__main__":
    key = jax.random.PRNGKey(0)

    B = 2
    L = 300                                        # not 128-aligned
    ancestries = {"anc0": 8, "anc1": 5, "anc2": 12}  # R not all multiples of 8

    def rand_pm1(k, shape):
        return jnp.where(jax.random.bernoulli(k, 0.5, shape), 1.0, -1.0).astype(
            jnp.float32)

    input_mixed, ref_panel = [], []
    for _ in range(B):
        key, k_inp = jax.random.split(key)
        input_mixed.append(rand_pm1(k_inp, (L,)))
        panels = {}
        for anc, r in ancestries.items():
            key, k_ref = jax.random.split(key)
            panels[anc] = rand_pm1(k_ref, (r, L))
        ref_panel.append(panels)

    # List/dict API (mirrors XOR.forward): per-sample fused calls.
    out = xor_forward(input_mixed, ref_panel)
    jax.block_until_ready(out)

    ok = True
    for inp, ref, got in zip(input_mixed, ref_panel, out):
        for anc in ref:
            expect = inp[None, :] * ref[anc]
            ok &= got[anc].shape == ref[anc].shape
            ok &= bool(jnp.allclose(got[anc], expect))

    # Batched entry point (pre-stacked panels, one fused call for the batch).
    xs = jnp.stack(input_mixed, axis=0)
    stacked = {anc: jnp.stack([r[anc] for r in ref_panel], axis=0)
               for anc in ancestries}
    out_b = xor_forward_arrays(xs, stacked)
    jax.block_until_ready(out_b)
    for anc in ancestries:
        expect = xs[:, None, :] * stacked[anc]
        ok &= out_b[anc].shape == stacked[anc].shape
        ok &= bool(jnp.allclose(out_b[anc], expect))

    assert ok, "Pallas output mismatch vs reference"
    print("KERNEL_OK")
</pallas_src>

<mosaic_0001>
module attributes {stable_mosaic.version = 11 : i64} {
  func.func @kernel(%arg0: i32, %arg1: i32, %arg2: memref<1x256xf32, #tpu.memory_space<vmem>>, %arg3: memref<8x256xf32, #tpu.memory_space<vmem>>, %arg4: memref<5x256xf32, #tpu.memory_space<vmem>>, %arg5: memref<12x256xf32, #tpu.memory_space<vmem>>, %arg6: memref<8x256xf32, #tpu.memory_space<vmem>>, %arg7: memref<5x256xf32, #tpu.memory_space<vmem>>, %arg8: memref<12x256xf32, #tpu.memory_space<vmem>>) attributes {dimension_semantics = [#tpu.dimension_semantics<parallel>, #tpu.dimension_semantics<parallel>], iteration_bounds = array<i64: 1, 2>, scalar_prefetch = 0 : i64, scratch_operands = 0 : i64, tpu.core_type = #tpu.core_type<tc>, window_params = [{transform_indices = @transform_0, window_bounds = array<i64: 1, 256>}, {transform_indices = @transform_1, window_bounds = array<i64: 8, 256>}, {transform_indices = @transform_2, window_bounds = array<i64: 5, 256>}, {transform_indices = @transform_3, window_bounds = array<i64: 12, 256>}, {transform_indices = @transform_4, window_bounds = array<i64: 8, 256>}, {transform_indices = @transform_5, window_bounds = array<i64: 5, 256>}, {transform_indices = @transform_6, window_bounds = array<i64: 12, 256>}]} {
    %c0 = arith.constant 0 : index
    %c0_0 = arith.constant 0 : index
    %0 = vector.load %arg2[%c0, %c0_0] : memref<1x256xf32, #tpu.memory_space<vmem>>, vector<1x256xf32>
    %c0_1 = arith.constant 0 : index
    %c0_2 = arith.constant 0 : index
    %1 = vector.load %arg3[%c0_1, %c0_2] : memref<8x256xf32, #tpu.memory_space<vmem>>, vector<8x256xf32>
    %2 = vector.broadcast %0 : vector<1x256xf32> to vector<8x256xf32>
    %3 = arith.mulf %1, %2 : vector<8x256xf32>
    %c0_3 = arith.constant 0 : index
    %c0_4 = arith.constant 0 : index
    %4 = vector.load %arg6[%c0_3, %c0_4] : memref<8x256xf32, #tpu.memory_space<vmem>>, vector<8x256xf32>
    tpu.vector_store %arg6[%c0_3, %c0_4], %3 {strides = array<i32>} : memref<8x256xf32, #tpu.memory_space<vmem>>, vector<8x256xf32>,
    %c0_5 = arith.constant 0 : index
    %c0_6 = arith.constant 0 : index
    %5 = vector.load %arg4[%c0_5, %c0_6] : memref<5x256xf32, #tpu.memory_space<vmem>>, vector<5x256xf32>
    %6 = vector.broadcast %0 : vector<1x256xf32> to vector<5x256xf32>
    %7 = arith.mulf %5, %6 : vector<5x256xf32>
    %c0_7 = arith.constant 0 : index
    %c0_8 = arith.constant 0 : index
    %8 = vector.load %arg7[%c0_7, %c0_8] : memref<5x256xf32, #tpu.memory_space<vmem>>, vector<5x256xf32>
    tpu.vector_store %arg7[%c0_7, %c0_8], %7 {strides = array<i32>} : memref<5x256xf32, #tpu.memory_space<vmem>>, vector<5x256xf32>,
    %c0_9 = arith.constant 0 : index
    %c0_10 = arith.constant 0 : index
    %9 = vector.load %arg5[%c0_9, %c0_10] : memref<12x256xf32, #tpu.memory_space<vmem>>, vector<12x256xf32>
    %10 = vector.broadcast %0 : vector<1x256xf32> to vector<12x256xf32>
    %11 = arith.mulf %9, %10 : vector<12x256xf32>
    %c0_11 = arith.constant 0 : index
    %c0_12 = arith.constant 0 : index
    %12 = vector.load %arg8[%c0_11, %c0_12] : memref<12x256xf32, #tpu.memory_space<vmem>>, vector<12x256xf32>
    tpu.vector_store %arg8[%c0_11, %c0_12], %11 {strides = array<i32>} : memref<12x256xf32, #tpu.memory_space<vmem>>, vector<12x256xf32>,
    return
  }
  func.func @transform_0(%arg0: i32, %arg1: i32) -> (i32, i32) {
    %c0_i32 = arith.constant 0 : i32
    %c0_i32_0 = arith.constant 0 : i32
    return %c0_i32, %arg1 : i32, i32
  }
  func.func @transform_1(%arg0: i32, %arg1: i32) -> (i32, i32) {
    %c0_i32 = arith.constant 0 : i32
    %c0_i32_0 = arith.constant 0 : i32
    return %c0_i32, %arg1 : i32, i32
  }
  func.func @transform_2(%arg0: i32, %arg1: i32) -> (i32, i32) {
    %c0_i32 = arith.constant 0 : i32
    %c0_i32_0 = arith.constant 0 : i32
    return %c0_i32, %arg1 : i32, i32
  }
  func.func @transform_3(%arg0: i32, %arg1: i32) -> (i32, i32) {
    %c0_i32 = arith.constant 0 : i32
    %c0_i32_0 = arith.constant 0 : i32
    return %c0_i32, %arg1 : i32, i32
  }
  func.func @transform_4(%arg0: i32, %arg1: i32) -> (i32, i32) {
    %c0_i32 = arith.constant 0 : i32
    %c0_i32_0 = arith.constant 0 : i32
    return %c0_i32, %arg1 : i32, i32
  }
  func.func @transform_5(%arg0: i32, %arg1: i32) -> (i32, i32) {
    %c0_i32 = arith.constant 0 : i32
    %c0_i32_0 = arith.constant 0 : i32
    return %c0_i32, %arg1 : i32, i32
  }
  func.func @transform_6(%arg0: i32, %arg1: i32) -> (i32, i32) {
    %c0_i32 = arith.constant 0 : i32
    %c0_i32_0 = arith.constant 0 : i32
    return %c0_i32, %arg1 : i32, i32
  }
}

</mosaic_0001>

<bundles_post_ra>
// kernel: _xor_multiply.1
= control target key start
LH: loop header
LB: loop body
LE: loop exit
PB: predicated region body
PF: predicated region fallthrough
CT: control target
= control target key end

     0   :  { %s1499_s0 = inlined_call_operand.vmem [shape: f32[1,300], index: 0, kind: input, shape index: {}]   ;;  %s1500_s1 = inlined_call_operand.hbm [shape: f32[8,300], index: 1, kind: input, shape index: {}]   ;;  %s1501_s2 = inlined_call_operand.hbm [shape: f32[5,300], index: 2, kind: input, shape index: {}]   ;;  %s1502_s3 = inlined_call_operand.hbm [shape: f32[12,300], index: 3, kind: input, shape index: {}]   ;;  %s1503_s4 = inlined_call_operand.hbm [shape: f32[8,300], index: 4, kind: output, shape index: {0}]   ;;  %s1504_s5 = inlined_call_operand.hbm [shape: f32[5,300], index: 5, kind: output, shape index: {1}]   ;;  %s1505_s6 = inlined_call_operand.hbm [shape: f32[12,300], index: 6, kind: output, shape index: {2}]  }
   0x1   :  { %1510 = sst [smem:[#allocation18_spill]] %s1500_s1 }
   0x2   :  { %12 = vsyncpa [#allocation3], 0 }
   0x3   :  { %14 = vsyncpa [#allocation3 + $0x1], 0 }
   0x4   :  { %15 = vsyncpa [#allocation6], 0 }
   0x5   :  { %17 = vsyncpa [#allocation6 + $0x1], 0 }
   0x6   :  { %18 = vsyncpa [#allocation4], 0 }
   0x7   :  { %20 = vsyncpa [#allocation4 + $0x1], 0 }
   0x8   :  { %21 = vsyncpa [#allocation10], 0 }
   0x9   :  { %23 = vsyncpa [#allocation10 + $0x1], 0  ;;  %s1161_s21 = smov 0   ;;  %s1163_s22 = smov 0  }
   0xa   :  { %s1165_s23 = smov 0   ;;  %s1167_s24 = smov 0  }
   0xb   :  { %s1169_s25 = smov 0   ;;  %s1171_s26 = smov 0  }
   0xc LB: > { %s1192_s27 = sadd.s32 4294967295, %s1114_s26   ;;  %s1506_s28 = sadd.s32 4294967294, %s1114_s26   ;;  %s1114_s26 = sphi %s1171_s26, %s29_s26   ;;  %s1110_s25 = sphi %s1169_s25, %s1528_s25   ;;  %s1106_s24 = sphi %s1167_s24, %s1527_s24   ;;  %s1102_s23 = sphi %s1165_s23, %s1526_s23   ;;  %s1098_s22 = sphi %s1163_s22, %s1525_s22   ;;  %s1094_s21 = sphi %s1161_s21, %s1524_s21  }
   0xd   : > { %s38_s29 = sadd.s32 1, %s1110_s25  ;;  %s74_s30 = sadd.s32 1, %s1102_s23 }
   0xe   : > { %p39_p0 = scmp.ge.s32.totalorder %s38_s29, 2  ;;  %p81_p1 = scmp.ne.s32.totalorder %s1102_s23, %s1098_s22 }
   0xf   : > { %p82_p2 = scmp.eq.s32.totalorder %s1114_s26, 0  ;;  %p87_p3 = scmp.ne.s32.totalorder %s1098_s22, %s1094_s21 }
  0x10   : > { %s1530_s29 = smov (%p39_p0, %s38_s29), 0  ;;  %p88_p5 = scmp.eq.s32.totalorder %s1192_s27, 0 }
  0x11   : > { %1511 = sst [smem:[#allocation16_spill]] %s1530_s29  ;;  %p1204_p4 = por %p82_p2, %p81_p1 }
  0x12   : > { %s71_s8 = ssub.s32 %s1110_s25, %s1530_s29  ;;  %p163_p6 = scmp.eq.s32.totalorder %s1192_s27, 1 }
  0x13   : > { %p72_p7 = scmp.eq.s32.totalorder %s71_s8, 0  ;;  %p1212_p8 = por %p88_p5, %p87_p3 }
  0x14   : > { %p1216_p9 = por %p163_p6, %p81_p1  ;;  %p169_p10 = scmp.eq.s32.totalorder %s1506_s28, 1 }
  0x15   : > { %s1223_s11 = scalar_select %p72_p7, %s1102_s23, %s74_s30  }
  0x16   : > { %p1225_p11 = por %p169_p10, %p87_p3  ;;  %p1508_p12 = scmp.ge.s32.totalorder %s1114_s26, 2 }
  0x17   : > { %1515 = sst [smem:[#allocation17_spill]] %s1223_s11 }
  0x18   : > { %s1516_s12 = scalar_select %p1225_p11, 1, 0 }
  0x19   : > { %237 = sbr.rel (%p1508_p12) target bundleno = 121 (0x79), region = 16 }
  0x1e   : > { %256 = sbr.rel (!%p1204_p4) target bundleno = 67 (0x43), region = 24  ;;  %s257_s13 = sand.u32 (%p1204_p4), 1, %s1102_s23  }
  0x1f   : > { %s764_s14 = sshll.u32 (%p1204_p4), %s1110_s25, 1  ;;  %s763_s15 = sshll.u32 (%p1204_p4), %s257_s13, 4 }
  0x20   : > { %s263_s16 = ssub.s32 (%p1204_p4), 3, %s764_s14  ;;  %s1239_s19 = scalar_lea.sflag (%p1204_p4), [#allocation3], %s257_s13 }
  0x21   : > { %p264_p13 = scmp.lt.s32.totalorder (%p1204_p4), %s263_s16, 2  ;;  %s261_s20 = scalar_lea.vmem (%p1204_p4), [#allocation2], %s763_s15 }
  0x23   : > { %s1532_s16 = smov (!%p264_p13, %s263_s16), 2 }
  0x24   : > { %s1236_s17 = sshll.u32 %s1532_s16, 7 }
  0x25   : > { %s268_s18 = ssub.s32 256, %s1236_s17 }
  0x26   : > { %269 = vsyncadd %s1239_s19, %s268_s18  ;;  %p766_p0 = scmp.ne.s32.totalorder %s1236_s17, 0  ;;  %s817_s30 = sshll.u32 %s1110_s25, 8 }
  0x27   : > { %s1517_s1 = sld [smem:[#allocation18_spill]]  ;;  %s275_s29 = sshll.u32 %s261_s20, 4  ;;  %s276_s29 = int_to_ptr.vmem [resolvable:$true] %s275_s29 }
  0x2d   : > { %s272_s14 = scalar_lea.hbm %s1517_s1, %s817_s30  ;;  %s900_s18 = scalar_lea.hbm %s1517_s1, 384 }
  0x2e   : > { %s896_s16 = scalar_lea.hbm %s272_s14, %s1236_s17 }
  0x2f   : > { %p897_p1 = scmp.ne.s32.totalorder %s272_s14, %s896_s16  ;;  %p902_p5 = scmp.lt.s32.totalorder %s900_s18, %s896_s16 }
  0x31   : > { %p898_p2 = pnand %p897_p1, %p766_p0 }
  0x33   : > { %p899_p3 = pneg %p898_p2 }
  0x35   : > { %p904_p6 = pnand %p902_p5, %p899_p3 }
  0x37   : > { %907 = shalt.err (!%p904_p6)
}
  0x38   : > { %s908_s11 = scalar_lea.vmem %s276_s29, %s1236_s17  ;;  %s1116_s28 = smov [#allocation2]  }
  0x39   : > { %p909_p7 = scmp.ne.s32.totalorder %s276_s29, %s908_s11  ;;  %s912_s20 = sshll.u32 %s1116_s28, 4  ;;  %s913_s20 = int_to_ptr.vmem [resolvable:$false] %s912_s20 }
  0x3a   : > { %s914_s30 = scalar_lea.vmem %s913_s20, 512  ;;  %p915_p1 = scmp.lt.s32.totalorder %s276_s29, %s913_s20 }
  0x3b   : > { %p910_p10 = pnand %p909_p7, %p766_p0  ;;  %p916_p2 = scmp.lt.s32.totalorder %s914_s30, %s908_s11 }
  0x3d   : > { %p911_p13 = pneg %p910_p10  ;;  %p917_p12 = por %p916_p2, %p915_p1 }
  0x3f   : > { %p918_p11 = pnand %p917_p12, %p911_p13 }
  0x41   : > { %921 = shalt.err (!%p918_p11)
}
  0x42   : > { %278 = dma.hbm_to_vmem [thread:$0]  (%p766_p0), %s272_s14, %s1236_s17, %s276_s29, %s1239_s19  }
  0x43 PF: > { %281 = sbr.rel (!%p1204_p4) target bundleno = 98 (0x62), region = 28  ;;  %s282_s8 = sand.u32 (%p1204_p4), 1, %s1114_s26  }
  0x44   : > { %s284_s16 = sand.u32 (%p1204_p4), 1, %s1102_s23   ;;  %s771_s15 = sshll.u32 (%p1204_p4), %s1110_s25, 1 }
  0x45   : > { %s770_s13 = sshll.u32 (%p1204_p4), %s284_s16, 4  ;;  %s288_s11 = ssub.s32 (%p1204_p4), 3, %s771_s15 }
  0x46   : > { %p289_p3 = scmp.lt.s32.totalorder (%p1204_p4), %s288_s11, 2  ;;  %s1268_s20 = scalar_lea.sflag (%p1204_p4), [#allocation6], %s282_s8 }
  0x47   : > { %s286_s29 = scalar_lea.vmem (%p1204_p4), [#allocation5], %s770_s13 }
  0x48   : > { %s1534_s11 = smov (!%p289_p3, %s288_s11), 2 }
  0x49   : > { %s1265_s18 = sshll.u32 %s1534_s11, 7 }
  0x4a   : > { %s293_s28 = ssub.s32 256, %s1265_s18 }
  0x4b   : > { %294 = vsyncadd %s1268_s20, %s293_s28  ;;  %p773_p11 = scmp.ne.s32.totalorder %s1265_s18, 0  ;;  %s818_s17 = sshll.u32 %s1110_s25, 8 }
  0x4c   : > { %s297_s30 = scalar_lea.hbm %s1501_s2, %s818_s17  ;;  %s300_s16 = sshll.u32 %s286_s29, 4  ;;  %s301_s16 = int_to_ptr.vmem [resolvable:$true] %s300_s16 }
  0x4d   : > { %s922_s15 = scalar_lea.hbm %s297_s30, %s1265_s18  ;;  %s926_s11 = scalar_lea.hbm %s1501_s2, 384 }
  0x4e   : > { %p923_p12 = scmp.ne.s32.totalorder %s297_s30, %s922_s15  ;;  %p928_p6 = scmp.lt.s32.totalorder %s926_s11, %s922_s15 }
  0x50   : > { %p924_p0 = pnand %p923_p12, %p773_p11 }
  0x52   : > { %p925_p5 = pneg %p924_p0 }
  0x54   : > { %p930_p7 = pnand %p928_p6, %p925_p5 }
  0x56   : > { %933 = shalt.err (!%p930_p7)
}
  0x57   : > { %s934_s28 = scalar_lea.vmem %s301_s16, %s1265_s18  ;;  %s1117_s29 = smov [#allocation5]  }
  0x58   : > { %p935_p10 = scmp.ne.s32.totalorder %s301_s16, %s934_s28  ;;  %s938_s17 = sshll.u32 %s1117_s29, 4  ;;  %s939_s17 = int_to_ptr.vmem [resolvable:$false] %s938_s17 }
  0x59   : > { %s940_s19 = scalar_lea.vmem %s939_s17, 512  ;;  %p941_p2 = scmp.lt.s32.totalorder %s301_s16, %s939_s17 }
  0x5a   : > { %p936_p13 = pnand %p935_p10, %p773_p11  ;;  %p942_p3 = scmp.lt.s32.totalorder %s940_s19, %s934_s28 }
  0x5c   : > { %p937_p1 = pneg %p936_p13  ;;  %p943_p12 = por %p942_p3, %p941_p2 }
  0x5e   : > { %p944_p0 = pnand %p943_p12, %p937_p1 }
  0x60   : > { %947 = shalt.err (!%p944_p0)
}
  0x61   : > { %303 = dma.hbm_to_vmem [thread:$0]  (%p773_p11), %s297_s30, %s1265_s18, %s301_s16, %s1268_s20  }
  0x62 PF: > { %306 = sbr.rel (!%p1204_p4) target bundleno = 121 (0x79), region = 32  ;;  %s307_s14 = sand.u32 (%p1204_p4), 1, %s1114_s26  }
  0x63   : > { %s309_s15 = sand.u32 (%p1204_p4), 1, %s1102_s23   ;;  %s778_s13 = sshll.u32 (%p1204_p4), %s1110_s25, 1 }
  0x64   : > { %s777_s8 = sshll.u32 (%p1204_p4), %s309_s15, 5  ;;  %s313_s11 = ssub.s32 (%p1204_p4), 3, %s778_s13 }
  0x65   : > { %p314_p5 = scmp.lt.s32.totalorder (%p1204_p4), %s313_s11, 2  ;;  %s1300_s20 = scalar_lea.sflag (%p1204_p4), [#allocation6], %s307_s14 }
  0x66   : > { %s311_s7 = scalar_lea.vmem (%p1204_p4), [#allocation7], %s777_s8 }
  0x67   : > { %s1536_s11 = smov (!%p314_p5, %s313_s11), 2 }
  0x68   : > { %s1297_s28 = sshll.u32 %s1536_s11, 8 }
  0x69   : > { %s318_s18 = ssub.s32 512, %s1297_s28 }
  0x6a   : > { %319 = vsyncadd %s1300_s20, %s318_s18  ;;  %p780_p4 = scmp.ne.s32.totalorder %s1297_s28, 0  ;;  %s819_s30 = sshll.u32 %s1110_s25, 8 }
  0x6b   : > { %s322_s17 = scalar_lea.hbm %s1502_s3, %s819_s30  ;;  %s782_s19 = sshll.u32 %s1536_s11, 3 }
  0x6c   : > { %s325_s15 = sshll.u32 %s311_s7, 4  ;;  %s1118_s14 = smov [#allocation7]   ;;  %s326_s15 = int_to_ptr.vmem [resolvable:$true] %s325_s15 }
  0x6d   : > { %s960_s13 = scalar_lea.vmem %s326_s15, %s1297_s28  ;;  %s964_s8 = sshll.u32 %s1118_s14, 4  ;;  %s965_s8 = int_to_ptr.vmem [resolvable:$false] %s964_s8 }
  0x6e   : > { %p961_p11 = scmp.ne.s32.totalorder %s326_s15, %s960_s13  ;;  %s966_s18 = scalar_lea.vmem %s965_s8, 1024 }
  0x6f   : > { %p967_p10 = scmp.lt.s32.totalorder %s326_s15, %s965_s8  ;;  %p968_p13 = scmp.lt.s32.totalorder %s966_s18, %s960_s13 }
  0x70   : > { %p962_p6 = pnand %p961_p11, %p780_p4 }
  0x71   : > { %p969_p1 = por %p968_p13, %p967_p10 }
  0x72   : > { %p963_p7 = pneg %p962_p6 }
  0x74   : > { %p970_p2 = pnand %p969_p1, %p963_p7 }
  0x76   : > { %973 = shalt.err (!%p970_p2)
}
  0x77   : > { %s1119_s1 = smov 384   ;;  %s1120_s11 = smov 256  }
  0x78   : > { %331 = dma.hbm_to_vmem [thread:$0]  (%p780_p4), %s322_s17, %s1297_s28, %s326_s15, %s1300_s20, %s1119_s1, %s1120_s11, %s782_s19  }
  0x79 PF: > { %p785_p3 = scmp.ge.s32.totalorder %s1114_s26, 1  ;;  %p333_p12 = scmp.lt.s32.totalorder %s1114_s26, 3 }
  0x7b   : > { %p334_p0 = pnand %p785_p3, %p333_p12 }
  0x7c   : > { %s1319_s7 = sand.u32 (!%p334_p0), 1, %s1098_s22  }
  0x7d   : > { %337 = sbr.rel (%p334_p0) target bundleno = 240 (0xf0), region = 36  ;;  %s1322_s30 = sshll.u32 (!%p334_p0), %s1319_s7, 4 }
  0x7e   : > { %s340_s16 = scalar_lea.sflag (!%p334_p0), [#allocation3], %s1319_s7  ;;  %s343_s29 = scalar_lea.vmem (!%p334_p0), [#allocation2], %s1322_s30 }
  0x82   : > { %1077 = dma.done.wait (%p1212_p8), %s340_s16, 256  }
  0x83   : > { %1079 = vsyncadd (%p1212_p8), %s340_s16, 4294967040  ;;  %s348_s1 = sand.u32 1, %s1192_s27   ;;  %s352_s20 = scalar_lea.vmem [#allocation5], %s1322_s30 }
  0x84   : > { %s349_s28 = scalar_lea.sflag [#allocation6], %s348_s1 }
  0x85   : > { %1081 = dma.done.wait (%p1212_p8), %s349_s28, 768  }
  0x86   : > { %1083 = vsyncadd (%p1212_p8), %s349_s28, 4294966528  ;;  %s1339_s17 = sshll.u32 %s1106_s24, 1  ;;  %v465_v0 = vlaneseq  ;;  %s788_s19 = sshll.u32 %s1319_s7, 5  ;;  %v462_v5 = vld [vmem:[%s343_s29] sm:$0xff]  ;;  %v463_v6 = vld [vmem:[%s343_s29 + $0x8] sm:$0xff] }
  0x87   : > { %p423_p5 = scmp.lt.s32.totalorder %s1339_s17, 2  ;;  %v479_v9 = vld [vmem:[%s352_s20] sm:$0x1f]  ;;  %v480_v10 = vld [vmem:[%s352_s20 + $0x8] sm:$0x1f]  ;;  %s361_s9 = scalar_lea.vmem [#allocation7], %s788_s19 }
  0x88   : > { %v466_v1 = vshrl.u32 %v465_v0, 7  ;;  %v485_v11 = vld [vmem:[%s361_s9] sm:$0xff]  ;;  %v486_v12 = vld [vmem:[%s361_s9 + $0x8] sm:$0xff]  ;;  %v487_v13 = vld [vmem:[%s361_s9 + $0x10] sm:$0xf]  ;;  %s403_s18 = scalar_lea.vmem [#allocation8], %s1322_s30 }
  0x89   : > { %s424_s15 = scalar_select %p423_p5, %s1339_s17, 2  ;;  %v488_v14 = vld [vmem:[%s361_s9 + $0x18] sm:$0xf] }
  0x8a   : > { %v467_v2 = vsub.s32 0, %v466_v1  ;;  %v471_v3 = vsub.s32 1, %v466_v1  ;;  %s1351_s11 = scalar_lea.vmem [#allocation9], %s1322_s30  ;;  %s1357_s16 = scalar_lea.vmem [#allocation11], %s788_s19 }
  0x8b   : > { %s425_s8 = scalar_lea.vmem %s1499_s0, %s424_s15  ;;  %s1509_s29 = scalar_lea.sflag [#allocation4], %s1319_s7 }
  0x8c   : > { %v461_v4 = vld [vmem:[%s425_s8] sm:$0x3]  ;;  %s1366_s28 = scalar_lea.sflag [#allocation10], %s348_s1  ;;  %s516_s30 = ssub.s32 (%p1216_p9), 3, %s1339_s17 }
  0x8d   : > { %v468_v7 = vrot.slane %v461_v4, %v467_v2  ;;  %v472_v8 = vrot.slane %v461_v4, %v471_v3  ;;  %p517_p8 = scmp.lt.s32.totalorder (%p1216_p9), %s516_s30, 2 }
  0x8f   : > { %v475_v15 = vmul.f32 %v468_v7, %v462_v5  ;;  %v476_v16 = vmul.f32 %v472_v8, %v463_v6  ;;  %v481_v17 = vmul.f32 %v479_v9, %v468_v7  ;;  %v482_v18 = vmul.f32 %v480_v10, %v472_v8 }
  0x90   : > { %v489_v19 = vmul.f32 %v485_v11, %v468_v7  ;;  %v490_v20 = vmul.f32 %v486_v12, %v472_v8  ;;  %v491_v21 = vmul.f32 %v487_v13, %v468_v7  ;;  %v492_v22 = vmul.f32 %v488_v14, %v472_v8  ;;  %514 = sbr.rel (!%p1216_p9) target bundleno = 176 (0xb0), region = 52 }
  0x91   : > { %477 = vst [vmem:[%s403_s18] sm:$0xff] %v475_v15  ;;  %478 = vst [vmem:[%s403_s18 + $0x8] sm:$0xff] %v476_v16 }
  0x92   : > { %483 = vst [vmem:[%s1351_s11] sm:$0x1f] %v481_v17  ;;  %484 = vst [vmem:[%s1351_s11 + $0x8] sm:$0x1f] %v482_v18 }
  0x93   : > { %493 = vst [vmem:[%s1357_s16] sm:$0xff] %v489_v19  ;;  %494 = vst [vmem:[%s1357_s16 + $0x8] sm:$0xff] %v490_v20 }
  0x94   : > { %495 = vst [vmem:[%s1357_s16 + $0x10] sm:$0xf] %v491_v21  ;;  %496 = vst [vmem:[%s1357_s16 + $0x18] sm:$0xf] %v492_v22 }
  0x95   : > { %s1538_s30 = smov (!%p517_p8, %s516_s30), 2 }
  0x96   : > { %s1371_s20 = sshll.u32 %s1538_s30, 7 }
  0x97   : > { %s521_s19 = ssub.s32 256, %s1371_s20 }
  0x98   : > { %522 = vsyncadd %s1509_s29, %s521_s19  ;;  %p798_p4 = scmp.ne.s32.totalorder %s1371_s20, 0  ;;  %s822_s27 = sshll.u32 %s1106_s24, 8 }
  0x99   : > { %s525_s13 = scalar_lea.hbm %s1503_s4, %s822_s27  ;;  %s528_s14 = sshll.u32 %s403_s18, 4  ;;  %s529_s14 = int_to_ptr.vmem [resolvable:$true] %s528_s14 }
  0x9a   : > { %s974_s8 = scalar_lea.vmem %s529_s14, %s1371_s20  ;;  %s1121_s9 = smov [#allocation8]  }
  0x9b   : > { %p975_p11 = scmp.ne.s32.totalorder %s529_s14, %s974_s8  ;;  %s978_s30 = sshll.u32 %s1121_s9, 4  ;;  %s979_s30 = int_to_ptr.vmem [resolvable:$false] %s978_s30 }
  0x9c   : > { %s980_s19 = scalar_lea.vmem %s979_s30, 512  ;;  %p981_p10 = scmp.lt.s32.totalorder %s529_s14, %s979_s30 }
  0x9d   : > { %p976_p6 = pnand %p975_p11, %p798_p4  ;;  %p982_p13 = scmp.lt.s32.totalorder %s980_s19, %s974_s8 }
  0x9f   : > { %p977_p7 = pneg %p976_p6  ;;  %p983_p1 = por %p982_p13, %p981_p10 }
  0xa1   : > { %p984_p2 = pnand %p983_p1, %p977_p7 }
  0xa3   : > { %987 = shalt.err (!%p984_p2)
}
  0xa4   : > { %s988_s1 = scalar_lea.hbm %s525_s13, %s1371_s20  ;;  %s992_s15 = scalar_lea.hbm %s1503_s4, 384 }
  0xa5   : > { %p989_p3 = scmp.ne.s32.totalorder %s525_s13, %s988_s1  ;;  %p993_p5 = scmp.lt.s32.totalorder %s525_s13, %s1503_s4 }
  0xa6   : > { %p994_p8 = scmp.lt.s32.totalorder %s992_s15, %s988_s1 }
  0xa7   : > { %p990_p12 = pnand %p989_p3, %p798_p4 }
  0xa8   : > { %p995_p11 = por %p994_p8, %p993_p5 }
  0xa9   : > { %p991_p0 = pneg %p990_p12 }
  0xab   : > { %p996_p6 = pnand %p995_p11, %p991_p0 }
  0xad   : > { %999 = shalt.err (!%p996_p6)
}
  0xae   : > { %s1518_s8 = scalar_lea.sflag [#allocation4], %s1319_s7 }
  0xaf   : > { %531 = dma.vmem_to_hbm [thread:$0]  (%p798_p4), %s529_s14, %s1371_s20, %s525_s13, %s1518_s8  }
  0xb0 PF: > { %534 = sbr.rel (!%p1216_p9) target bundleno = 207 (0xcf), region = 56  ;;  %s536_s30 = ssub.s32 (%p1216_p9), 3, %s1339_s17 }
  0xb1   : > { %p537_p7 = scmp.lt.s32.totalorder (%p1216_p9), %s536_s30, 2 }
  0xb5   : > { %s1540_s30 = smov (!%p537_p7, %s536_s30), 2 }
  0xb6   : > { %s1401_s29 = sshll.u32 %s1540_s30, 7 }
  0xb7   : > { %s541_s19 = ssub.s32 256, %s1401_s29 }
  0xb8   : > { %542 = vsyncadd %s1366_s28, %s541_s19  ;;  %p804_p4 = scmp.ne.s32.totalorder %s1401_s29, 0  ;;  %s823_s7 = sshll.u32 %s1106_s24, 8 }
  0xb9   : > { %s545_s14 = scalar_lea.hbm %s1504_s5, %s823_s7  ;;  %s548_s1 = sshll.u32 %s1351_s11, 4  ;;  %s549_s1 = int_to_ptr.vmem [resolvable:$true] %s548_s1 }
  0xba   : > { %s1000_s18 = scalar_lea.vmem %s549_s1, %s1401_s29  ;;  %s1122_s27 = smov [#allocation9]  }
  0xbb   : > { %p1001_p10 = scmp.ne.s32.totalorder %s549_s1, %s1000_s18  ;;  %s1004_s15 = sshll.u32 %s1122_s27, 4  ;;  %s1005_s15 = int_to_ptr.vmem [resolvable:$false] %s1004_s15 }
  0xbc   : > { %s1006_s9 = scalar_lea.vmem %s1005_s15, 512  ;;  %p1007_p2 = scmp.lt.s32.totalorder %s549_s1, %s1005_s15 }
  0xbd   : > { %p1002_p13 = pnand %p1001_p10, %p804_p4  ;;  %p1008_p3 = scmp.lt.s32.totalorder %s1006_s9, %s1000_s18 }
  0xbf   : > { %p1003_p1 = pneg %p1002_p13  ;;  %p1009_p12 = por %p1008_p3, %p1007_p2 }
  0xc1   : > { %p1010_p0 = pnand %p1009_p12, %p1003_p1 }
  0xc3   : > { %1013 = shalt.err (!%p1010_p0)
}
  0xc4   : > { %s1014_s8 = scalar_lea.hbm %s545_s14, %s1401_s29  ;;  %s1018_s19 = scalar_lea.hbm %s1504_s5, 384 }
  0xc5   : > { %p1015_p5 = scmp.ne.s32.totalorder %s545_s14, %s1014_s8  ;;  %p1019_p6 = scmp.lt.s32.totalorder %s545_s14, %s1504_s5 }
  0xc6   : > { %p1020_p7 = scmp.lt.s32.totalorder %s1018_s19, %s1014_s8 }
  0xc7   : > { %p1016_p8 = pnand %p1015_p5, %p804_p4 }
  0xc8   : > { %p1021_p10 = por %p1020_p7, %p1019_p6 }
  0xc9   : > { %p1017_p11 = pneg %p1016_p8 }
  0xcb   : > { %p1022_p13 = pnand %p1021_p10, %p1017_p11 }
  0xcd   : > { %1025 = shalt.err (!%p1022_p13)
}
  0xce   : > { %551 = dma.vmem_to_hbm [thread:$0]  (%p804_p4), %s549_s1, %s1401_s29, %s545_s14, %s1366_s28  }
  0xcf PF: > { %554 = sbr.rel (!%p1216_p9) target bundleno = 240 (0xf0), region = 60  ;;  %s556_s13 = ssub.s32 (%p1216_p9), 3, %s1339_s17 }
  0xd0   : > { %p557_p1 = scmp.lt.s32.totalorder (%p1216_p9), %s556_s13, 2 }
  0xd4   : > { %s1542_s13 = smov (!%p557_p1, %s556_s13), 2 }
  0xd5   : > { %s1433_s18 = sshll.u32 %s1542_s13, 8 }
  0xd6   : > { %s561_s27 = ssub.s32 512, %s1433_s18 }
  0xd7   : > { %562 = vsyncadd %s1366_s28, %s561_s27  ;;  %p810_p4 = scmp.ne.s32.totalorder %s1433_s18, 0  ;;  %s824_s10 = sshll.u32 %s1106_s24, 8 }
  0xd8   : > { %s1442_s17 = scalar_lea.hbm %s1505_s6, %s824_s10  ;;  %s812_s1 = sshll.u32 %s1542_s13, 3 }
  0xd9   : > { %s568_s15 = sshll.u32 %s1357_s16, 4  ;;  %s1123_s8 = smov [#allocation11]   ;;  %s1446_s15 = int_to_ptr.vmem [resolvable:$true] %s568_s15 }
  0xda   : > { %s1026_s9 = scalar_lea.vmem %s1446_s15, %s1433_s18  ;;  %s1030_s11 = sshll.u32 %s1123_s8, 4  ;;  %s1031_s11 = int_to_ptr.vmem [resolvable:$false] %s1030_s11 }
  0xdb   : > { %p1027_p9 = scmp.ne.s32.totalorder %s1446_s15, %s1026_s9  ;;  %s1032_s24 = scalar_lea.vmem %s1031_s11, 1024 }
  0xdc   : > { %p1033_p12 = scmp.lt.s32.totalorder %s1446_s15, %s1031_s11  ;;  %p1034_p0 = scmp.lt.s32.totalorder %s1032_s24, %s1026_s9 }
  0xdd   : > { %p1028_p2 = pnand %p1027_p9, %p810_p4 }
  0xde   : > { %p1035_p5 = por %p1034_p0, %p1033_p12 }
  0xdf   : > { %p1029_p3 = pneg %p1028_p2 }
  0xe1   : > { %p1036_p8 = pnand %p1035_p5, %p1029_p3 }
  0xe3   : > { %1039 = shalt.err (!%p1036_p8)
}
  0xe4   : > { %s1040_s16 = scalar_lea.hbm %s1442_s17, %s1433_s18  ;;  %s1044_s7 = scalar_lea.hbm %s1505_s6, 768 }
  0xe5   : > { %p1041_p11 = scmp.ne.s32.totalorder %s1442_s17, %s1040_s16  ;;  %p1045_p10 = scmp.lt.s32.totalorder %s1442_s17, %s1505_s6 }
  0xe6   : > { %p1046_p13 = scmp.lt.s32.totalorder %s1044_s7, %s1040_s16 }
  0xe7   : > { %p1042_p6 = pnand %p1041_p11, %p810_p4 }
  0xe8   : > { %p1047_p1 = por %p1046_p13, %p1045_p10 }
  0xe9   : > { %p1043_p7 = pneg %p1042_p6 }
  0xeb   : > { %p1048_p9 = pnand %p1047_p1, %p1043_p7 }
  0xed   : > { %1051 = shalt.err (!%p1048_p9)
}
  0xee   : > { %s1124_s10 = smov 256   ;;  %s1125_s29 = smov 384  }
  0xef   : > { %574 = dma.vmem_to_hbm [thread:$0]  (%p810_p4), %s1446_s15, %s1433_s18, %s1442_s17, %s1366_s28, %s1124_s10, %s1125_s29, %s812_s1  }
  0xf0 PF: > { %s583_s14 = sand.u32 1, %s1094_s21   ;;  %p1519_p2 = scmp.ne.s32.totalorder %s1516_s12, 0 }
  0xf1   : > { %p1520_p3 = scmp.ge.s32.totalorder %s1114_s26, 2  ;;  %s584_s9 = scalar_lea.sflag [#allocation4], %s583_s14 }
  0xf3   : > { %p834_p12 = pnand %p1520_p3, %p1519_p2 }
  0xf5   : > { %p835_p0 = pneg %p834_p12 }
  0xf7   : > { %1085 = dma.done.wait (%p835_p0), %s584_s9, 256  }
  0xf8   : > { %1087 = vsyncadd (%p835_p0), %s584_s9, 4294967040  ;;  %s1521_s8 = sadd.s32 4294967294, %s1114_s26  }
  0xf9   : > { %s592_s11 = sand.u32 1, %s1521_s8  }
  0xfa   : > { %s593_s24 = scalar_lea.sflag [#allocation10], %s592_s11 }
  0xfb   : > { %1089 = dma.done.wait (%p835_p0), %s593_s24, 768  }
  0xfc   : > { %1091 = vsyncadd (%p835_p0), %s593_s24, 4294966528  ;;  %s29_s26 = sadd.s32 1, %s1114_s26   ;;  %s1522_s28 = sld [smem:[#allocation17_spill]] }
  0xfd   : > { %p26_p4 = scmp.ge.s32.totalorder %s29_s26, 4   ;;  %s1523_s12 = sld [smem:[#allocation16_spill]] }
  0xfe   : > { %s1524_s21 = smov %s1098_s22  ;;  %s1525_s22 = smov %s1102_s23 }
  0xff   : > { %s1527_s24 = smov %s1110_s25  ;;  %28 = sbr.rel (!%p26_p4) target bundleno = 12 (0xc), region = 140 }
 0x102   : > { %s1526_s23 = smov %s1522_s28 }
 0x103   : > { %s1528_s25 = smov %s1523_s12 }
 0x104   :  { %607 = vsyncpa [#allocation3], 1 }
 0x105   :  { %609 = vsyncpa [#allocation3 + $0x1], 1 }
 0x106   :  { %610 = vsyncpa [#allocation6], 1 }
 0x107   :  { %612 = vsyncpa [#allocation6 + $0x1], 1 }
 0x108   :  { %613 = vsyncpa [#allocation4], 1 }
 0x109   :  { %615 = vsyncpa [#allocation4 + $0x1], 1 }
 0x10a   :  { %616 = vsyncpa [#allocation10], 1 }
 0x10b   :  { %618 = vsyncpa [#allocation10 + $0x1], 1 }

</bundles_post_ra>
